<compile_context>
chip_gen: v6e
topology: v6e:2x2x1
jax: 0.10.0
libtpu: 0.0.40
codegen_flags: <defaults>
</compile_context>

<pallas_src>
import math
import functools

import jax
import jax.numpy as jnp
from jax import lax
from jax.experimental import pallas as pl
from jax.experimental.pallas import tpu as pltpu


def _round_up(x: int, m: int) -> int:
    return ((x + m - 1) // m) * m


def _pick_group_size(num_heads: int, d_k: int, tq: int, s_pad: int) -> int:
    """Largest divisor of num_heads with G*d_k <= 256 (MXU width), capped for
    unroll size and so the f32 softmax temps stay within a VMEM budget."""
    target = min(max(1, 256 // max(d_k, 1)), 8)
    best = 1
    for g in range(1, num_heads + 1):
        if num_heads % g != 0 or g > target:
            continue
        if 3 * g * tq * s_pad * 4 > (24 << 20):   # ~3 live f32 (tq,S) slabs / head
            continue
        best = g
    return best


def _make_mha_kernel(*, group: int, d_k: int, s_valid: int, s_pad: int,
                     return_attention: bool):
    gdk = group * d_k
    neg = jnp.float32(-1e30)

    def mha_kernel(xq_ref, xk_ref, xv_ref,
                   wq_ref, wk_ref, wv_ref, wh_ref, bh_ref,
                   *outs):
        if return_attention:
            h_ref, a_ref, acc_ref = outs
        else:
            h_ref, acc_ref = outs

        g = pl.program_id(2)                     # head-group index (reduction axis)

        # Init the per-(batch, q-tile) output accumulator at the first group.
        @pl.when(g == 0)
        def _():
            acc_ref[...] = jnp.zeros_like(acc_ref)

        xq = xq_ref[0]                           # (tq, d_xq)
        xk = xk_ref[0]                           # (S_pad, d_xk)
        xv = xv_ref[0]                           # (S_pad, d_xv)
        cdt = xq.dtype                           # compute dtype = caller dtype

        # Resident weight stacks; dynamic first-axis index picks this group.
        wq = wq_ref[g]                           # (d_xq, G*d_k)  (1/sqrt(d_k) folded)
        wk = wk_ref[g]                           # (d_xk, G*d_k)
        wv = wv_ref[g]                           # (d_xv, G*d_k)
        wh = wh_ref[g]                           # (G*d_k, d_model)

        # Wide QKV projections: output width G*d_k -> high MXU occupancy.
        q = jnp.dot(xq, wq, preferred_element_type=jnp.float32)   # (tq, gdk) f32
        k = jnp.dot(xk, wk, preferred_element_type=jnp.float32)   # (S_pad, gdk)
        v = jnp.dot(xv, wv, preferred_element_type=jnp.float32)   # (S_pad, gdk)

        if s_pad > s_valid:
            key_ok = lax.broadcasted_iota(jnp.int32, (1, s_pad), 1) < s_valid
        else:
            key_ok = None

        # Per-head attention (static unroll over the G heads of this group).
        pv_parts = []
        for h in range(group):
            lo = h * d_k
            qh = q[:, lo:lo + d_k].astype(cdt)   # (tq, d_k)
            kh = k[:, lo:lo + d_k].astype(cdt)   # (S_pad, d_k)
            vh = v[:, lo:lo + d_k].astype(cdt)   # (S_pad, d_k)

            # scores = Q @ K^T without an explicit transpose (contract last axes).
            s = lax.dot_general(qh, kh,
                                dimension_numbers=(((1,), (1,)), ((), ())),
                                preferred_element_type=jnp.float32)  # (tq, S_pad)
            if key_ok is not None:
                s = jnp.where(key_ok, s, neg)    # mask padded key columns

            # Softmax in f32 (max-subtracted), EUP reciprocal for the denom.
            s = s - jnp.max(s, axis=-1, keepdims=True)
            e = jnp.exp(s)
            attn = e * pl.reciprocal(jnp.sum(e, axis=-1, keepdims=True),
                                     approx=True)

            if return_attention:
                a_ref[0, h] = attn.astype(a_ref.dtype)

            pv_parts.append(jnp.dot(attn.astype(cdt), vh,
                                    preferred_element_type=jnp.float32))  # (tq, d_k)

        pv = pv_parts[0] if group == 1 else jnp.concatenate(pv_parts, axis=-1)

        # Fold this group's slice of the output projection (wide K = G*d_k).
        acc_ref[...] += jnp.dot(pv.astype(wh.dtype), wh,
                                preferred_element_type=jnp.float32)       # (tq, D)

        # Bias add + store once all head groups have been accumulated.
        @pl.when(g == pl.num_programs(2) - 1)
        def _():
            h_ref[0] = (acc_ref[...] + bh_ref[...]).astype(h_ref.dtype)

    return mha_kernel


@functools.partial(jax.jit, static_argnames=("num_heads", "return_attention"))
def multi_head_attention(x_q, x_k, x_v, wq, wk, wv, wh, bh,
                         *, num_heads, return_attention=True):
    """Pallas MHA forward. Returns (H [B,S,D], A [B,H,S,S] or None)."""
    B, S, d_xq = x_q.shape
    _, _, d_xk = x_k.shape
    _, _, d_xv = x_v.shape
    d_model = wq.shape[1]
    assert d_model % num_heads == 0
    d_k = d_model // num_heads

    # --- layout work in the wrapper (no FLOPs) -----------------------------
    # Pad S so A / H stores are lane-dense; padded keys are masked in-kernel.
    S_pad = _round_up(S, 128) if S > 128 else _round_up(S, 8)
    if S_pad != S:
        pad = ((0, 0), (0, S_pad - S), (0, 0))
        x_q = jnp.pad(x_q, pad)
        x_k = jnp.pad(x_k, pad)
        x_v = jnp.pad(x_v, pad)

    # Query tile (bounds VMEM working set; second parallel axis when B == 1).
    if S_pad <= 256:
        tq = S_pad
    elif S_pad % 256 == 0:
        tq = 256
    else:
        tq = 128
    n_q = S_pad // tq

    # Head grouping to fill the MXU.
    G = _pick_group_size(num_heads, d_k, tq, S_pad)
    num_groups = num_heads // G
    gdk = G * d_k

    # Pre-split weights per head group; fold 1/sqrt(d_k) into Wq.
    scale = 1.0 / math.sqrt(d_k)
    wq_g = (wq.astype(jnp.float32) * scale).astype(wq.dtype)
    wq_g = wq_g.reshape(d_xq, num_groups, gdk).transpose(1, 0, 2)   # (NG, d_xq, gdk)
    wk_g = wk.reshape(d_xk, num_groups, gdk).transpose(1, 0, 2)     # (NG, d_xk, gdk)
    wv_g = wv.reshape(d_xv, num_groups, gdk).transpose(1, 0, 2)     # (NG, d_xv, gdk)
    wh_g = wh.reshape(num_groups, gdk, d_model)                     # (NG, gdk, D)
    bh2 = jnp.reshape(bh, (1, d_model))

    # --- VMEM budget (v5e scoped default is only 16 MiB) -------------------
    wdt = jnp.dtype(wq.dtype).itemsize
    adt = jnp.dtype(x_q.dtype).itemsize
    w_bytes = 2 * num_groups * ((d_xq + d_xk + d_xv) * gdk + gdk * d_model) * wdt
    act_bytes = 2 * (tq * d_xq + S_pad * (d_xk + d_xv)) * adt
    h_bytes = 2 * tq * d_model * adt
    a_bytes = (2 * G * tq * S_pad * adt) if return_attention else 0
    acc_bytes = tq * d_model * 4
    tmp_bytes = (tq + 2 * S_pad) * gdk * 4 + 4 * tq * S_pad * 4 + tq * gdk * 4
    est = w_bytes + act_bytes + h_bytes + a_bytes + acc_bytes + tmp_bytes
    vmem_limit = int(min(max(int(est * 1.5) + (4 << 20), 32 << 20), 128 << 20))

    kernel = _make_mha_kernel(group=G, d_k=d_k, s_valid=S, s_pad=S_pad,
                              return_attention=return_attention)

    out_shape = [jax.ShapeDtypeStruct((B, S_pad, d_model), x_q.dtype)]
    out_specs = [pl.BlockSpec((1, tq, d_model), lambda b, qi, g: (b, qi, 0))]
    if return_attention:
        # A emitted in the caller's dtype (bf16 callers halve the writeback).
        out_shape.append(
            jax.ShapeDtypeStruct((B, num_heads, S_pad, S_pad), x_q.dtype))
        out_specs.append(
            pl.BlockSpec((1, G, tq, S_pad), lambda b, qi, g: (b, g, qi, 0)))

    results = pl.pallas_call(
        kernel,
        out_shape=tuple(out_shape),
        grid_spec=pltpu.PrefetchScalarGridSpec(
            num_scalar_prefetch=0,
            grid=(B, n_q, num_groups),
            in_specs=[
                # Activations.
                pl.BlockSpec((1, tq, d_xq), lambda b, qi, g: (b, qi, 0)),
                pl.BlockSpec((1, S_pad, d_xk), lambda b, qi, g: (b, 0, 0)),
                pl.BlockSpec((1, S_pad, d_xv), lambda b, qi, g: (b, 0, 0)),
                # Weight stacks: full-array blocks, constant index map ->
                # DMA'd once, VMEM-resident for the whole kernel.
                pl.BlockSpec((num_groups, d_xq, gdk), lambda b, qi, g: (0, 0, 0)),
                pl.BlockSpec((num_groups, d_xk, gdk), lambda b, qi, g: (0, 0, 0)),
                pl.BlockSpec((num_groups, d_xv, gdk), lambda b, qi, g: (0, 0, 0)),
                pl.BlockSpec((num_groups, gdk, d_model), lambda b, qi, g: (0, 0, 0)),
                pl.BlockSpec((1, d_model), lambda b, qi, g: (0, 0)),
            ],
            out_specs=out_specs,
            scratch_shapes=[pltpu.VMEM((tq, d_model), jnp.float32)],
        ),
        compiler_params=pltpu.CompilerParams(
            # batch & query-tile axes are independent (megacore-shardable);
            # the head-group axis accumulates into H so it must be arbitrary.
            dimension_semantics=("parallel", "parallel", "arbitrary"),
            vmem_limit_bytes=vmem_limit),
    )(x_q, x_k, x_v, wq_g, wk_g, wv_g, wh_g, bh2)

    h = results[0]
    a = results[1] if return_attention else None
    if S_pad != S:
        h = h[:, :S, :]
        if a is not None:
            a = a[:, :, :S, :S]
    return h, a


def _reference(x_q, x_k, x_v, wq, wk, wv, wh, bh, num_heads):
    B, S, _ = x_q.shape
    d_model = wq.shape[1]
    d_k = d_model // num_heads
    q = (x_q @ wq).reshape(B, S, num_heads, d_k).transpose(0, 2, 1, 3)
    k = (x_k @ wk).reshape(B, S, num_heads, d_k).transpose(0, 2, 1, 3)
    v = (x_v @ wv).reshape(B, S, num_heads, d_k).transpose(0, 2, 1, 3)
    scores = jnp.einsum("bhqd,bhkd->bhqk", q / math.sqrt(d_k), k)
    a = jax.nn.softmax(scores, axis=-1)
    h = jnp.einsum("bhqk,bhkd->bhqd", a, v)
    h = h.transpose(0, 2, 1, 3).reshape(B, S, d_model)
    return h @ wh + bh, a


if __name__ == "__main__":
    # Small shapes consistent with forward(X_q, X_k, X_v) of shape [B, S, d_model].
    B, S, d_model, num_heads = 2, 8, 32, 4

    key = jax.random.PRNGKey(0)
    kq, kk, kv, kwq, kwk, kwv, kwh, kbh = jax.random.split(key, 8)

    x_q = jax.random.normal(kq, (B, S, d_model), dtype=jnp.float32)
    x_k = jax.random.normal(kk, (B, S, d_model), dtype=jnp.float32)
    x_v = jax.random.normal(kv, (B, S, d_model), dtype=jnp.float32)

    # Deterministic synthetic parameters (Linear weights stored as [d_in, d_out]).
    wq = jax.random.normal(kwq, (d_model, d_model), dtype=jnp.float32) * 0.05
    wk = jax.random.normal(kwk, (d_model, d_model), dtype=jnp.float32) * 0.05
    wv = jax.random.normal(kwv, (d_model, d_model), dtype=jnp.float32) * 0.05
    wh = jax.random.normal(kwh, (d_model, d_model), dtype=jnp.float32) * 0.05
    bh = (jax.random.normal(kbh, (1, d_model), dtype=jnp.float32) * 0.01)

    h_out, a_out = multi_head_attention(
        x_q, x_k, x_v, wq, wk, wv, wh, bh, num_heads=num_heads)
    jax.block_until_ready((h_out, a_out))

    # Verify against a pure-JAX reference of the PyTorch forward.
    # (Tolerance accounts for the approx EUP reciprocal in the softmax denom.)
    h_ref, a_ref = _reference(x_q, x_k, x_v, wq, wk, wv, wh, bh, num_heads)
    assert h_out.shape == (B, S, d_model)
    assert a_out.shape == (B, num_heads, S, S)
    assert jnp.allclose(h_out, h_ref, atol=2e-3, rtol=2e-3)
    assert jnp.allclose(a_out, a_ref, atol=2e-3, rtol=2e-3)

    # Also exercise the A-free fast path (skips the dominant HBM writeback).
    h_only, a_none = multi_head_attention(
        x_q, x_k, x_v, wq, wk, wv, wh, bh,
        num_heads=num_heads, return_attention=False)
    jax.block_until_ready(h_only)
    assert a_none is None
    assert jnp.allclose(h_only, h_ref, atol=2e-3, rtol=2e-3)

    print("KERNEL_OK")
</pallas_src>

<mosaic_0001>
module attributes {stable_mosaic.version = 11 : i64} {
  func.func @mha_kernel(%arg0: i32, %arg1: i32, %arg2: i32, %arg3: memref<1x8x32xf32, #tpu.memory_space<vmem>>, %arg4: memref<1x8x32xf32, #tpu.memory_space<vmem>>, %arg5: memref<1x8x32xf32, #tpu.memory_space<vmem>>, %arg6: memref<1x32x32xf32, #tpu.memory_space<vmem>>, %arg7: memref<1x32x32xf32, #tpu.memory_space<vmem>>, %arg8: memref<1x32x32xf32, #tpu.memory_space<vmem>>, %arg9: memref<1x32x32xf32, #tpu.memory_space<vmem>>, %arg10: memref<1x32xf32, #tpu.memory_space<vmem>>, %arg11: memref<1x8x32xf32, #tpu.memory_space<vmem>>, %arg12: memref<1x4x8x8xf32, #tpu.memory_space<vmem>>, %arg13: memref<8x32xf32, #tpu.memory_space<vmem>>) attributes {dimension_semantics = [#tpu.dimension_semantics<parallel>, #tpu.dimension_semantics<parallel>, #tpu.dimension_semantics<arbitrary>], iteration_bounds = array<i64: 2, 1, 1>, scalar_prefetch = 0 : i64, scratch_operands = 1 : i64, tpu.core_type = #tpu.core_type<tc>, window_params = [{transform_indices = @transform_0, window_bounds = array<i64: 1, 8, 32>}, {transform_indices = @transform_1, window_bounds = array<i64: 1, 8, 32>}, {transform_indices = @transform_2, window_bounds = array<i64: 1, 8, 32>}, {pipeline_mode = #tpu.pipeline_mode<synchronous>, transform_indices = @transform_3, window_bounds = array<i64: 1, 32, 32>}, {pipeline_mode = #tpu.pipeline_mode<synchronous>, transform_indices = @transform_4, window_bounds = array<i64: 1, 32, 32>}, {pipeline_mode = #tpu.pipeline_mode<synchronous>, transform_indices = @transform_5, window_bounds = array<i64: 1, 32, 32>}, {pipeline_mode = #tpu.pipeline_mode<synchronous>, transform_indices = @transform_6, window_bounds = array<i64: 1, 32, 32>}, {pipeline_mode = #tpu.pipeline_mode<synchronous>, transform_indices = @transform_7, window_bounds = array<i64: 1, 32>}, {transform_indices = @transform_8, window_bounds = array<i64: 1, 8, 32>}, {transform_indices = @transform_9, window_bounds = array<i64: 1, 4, 8, 8>}]} {
    %c0_i32 = arith.constant 0 : i32
    %0 = arith.cmpi eq, %arg2, %c0_i32 : i32
    %1 = arith.extui %0 : i1 to i32
    %c0_i32_0 = arith.constant 0 : i32
    %2 = arith.cmpi ne, %1, %c0_i32_0 : i32
    scf.if %2 {
      %cst_55 = arith.constant 0.000000e+00 : f32
      %104 = vector.broadcast %cst_55 : f32 to vector<8x32xf32>
      %c0_56 = arith.constant 0 : index
      %c0_57 = arith.constant 0 : index
      %105 = vector.load %arg13[%c0_56, %c0_57] : memref<8x32xf32, #tpu.memory_space<vmem>>, vector<8x32xf32>
      tpu.vector_store %arg13[%c0_56, %c0_57], %104 {strides = array<i32>} : memref<8x32xf32, #tpu.memory_space<vmem>>, vector<8x32xf32>,
    } else {
    }
    %c0 = arith.constant 0 : index
    %c0_1 = arith.constant 0 : index
    %c0_2 = arith.constant 0 : index
    %3 = vector.load %arg3[%c0, %c0_1, %c0_2] : memref<1x8x32xf32, #tpu.memory_space<vmem>>, vector<1x8x32xf32>
    %4 = vector.shape_cast %3 : vector<1x8x32xf32> to vector<8x32xf32>
    %c0_3 = arith.constant 0 : index
    %c0_4 = arith.constant 0 : index
    %c0_5 = arith.constant 0 : index
    %5 = vector.load %arg4[%c0_3, %c0_4, %c0_5] : memref<1x8x32xf32, #tpu.memory_space<vmem>>, vector<1x8x32xf32>
    %6 = vector.shape_cast %5 : vector<1x8x32xf32> to vector<8x32xf32>
    %c0_6 = arith.constant 0 : index
    %c0_7 = arith.constant 0 : index
    %c0_8 = arith.constant 0 : index
    %7 = vector.load %arg5[%c0_6, %c0_7, %c0_8] : memref<1x8x32xf32, #tpu.memory_space<vmem>>, vector<1x8x32xf32>
    %8 = vector.shape_cast %7 : vector<1x8x32xf32> to vector<8x32xf32>
    %9 = arith.index_cast %arg2 : i32 to index
    %c0_9 = arith.constant 0 : index
    %c0_10 = arith.constant 0 : index
    %10 = vector.load %arg6[%9, %c0_9, %c0_10] : memref<1x32x32xf32, #tpu.memory_space<vmem>>, vector<1x32x32xf32>
    %11 = vector.shape_cast %10 : vector<1x32x32xf32> to vector<32x32xf32>
    %12 = arith.index_cast %arg2 : i32 to index
    %c0_11 = arith.constant 0 : index
    %c0_12 = arith.constant 0 : index
    %13 = vector.load %arg7[%12, %c0_11, %c0_12] : memref<1x32x32xf32, #tpu.memory_space<vmem>>, vector<1x32x32xf32>
    %14 = vector.shape_cast %13 : vector<1x32x32xf32> to vector<32x32xf32>
    %15 = arith.index_cast %arg2 : i32 to index
    %c0_13 = arith.constant 0 : index
    %c0_14 = arith.constant 0 : index
    %16 = vector.load %arg8[%15, %c0_13, %c0_14] : memref<1x32x32xf32, #tpu.memory_space<vmem>>, vector<1x32x32xf32>
    %17 = vector.shape_cast %16 : vector<1x32x32xf32> to vector<32x32xf32>
    %18 = arith.index_cast %arg2 : i32 to index
    %c0_15 = arith.constant 0 : index
    %c0_16 = arith.constant 0 : index
    %19 = vector.load %arg9[%18, %c0_15, %c0_16] : memref<1x32x32xf32, #tpu.memory_space<vmem>>, vector<1x32x32xf32>
    %20 = vector.shape_cast %19 : vector<1x32x32xf32> to vector<32x32xf32>
    %cst = arith.constant dense<0.000000e+00> : vector<8x32xf32>
    %21 = tpu.matmul %4, %11, %cst {dimension_numbers = #tpu.dot_dimension_numbers<[1], [0], [0], [1], [0, 0, 1, 1], [], []>} : vector<8x32xf32>, vector<32x32xf32>, vector<8x32xf32> -> vector<8x32xf32>
    %cst_17 = arith.constant dense<0.000000e+00> : vector<8x32xf32>
    %22 = tpu.matmul %6, %14, %cst_17 {dimension_numbers = #tpu.dot_dimension_numbers<[1], [0], [0], [1], [0, 0, 1, 1], [], []>} : vector<8x32xf32>, vector<32x32xf32>, vector<8x32xf32> -> vector<8x32xf32>
    %cst_18 = arith.constant dense<0.000000e+00> : vector<8x32xf32>
    %23 = tpu.matmul %8, %17, %cst_18 {dimension_numbers = #tpu.dot_dimension_numbers<[1], [0], [0], [1], [0, 0, 1, 1], [], []>} : vector<8x32xf32>, vector<32x32xf32>, vector<8x32xf32> -> vector<8x32xf32>
    %24 = vector.extract_strided_slice %21 {offsets = [0, 0], sizes = [8, 8], strides = [1, 1]} : vector<8x32xf32> to vector<8x8xf32>
    %25 = vector.extract_strided_slice %22 {offsets = [0, 0], sizes = [8, 8], strides = [1, 1]} : vector<8x32xf32> to vector<8x8xf32>
    %26 = vector.extract_strided_slice %23 {offsets = [0, 0], sizes = [8, 8], strides = [1, 1]} : vector<8x32xf32> to vector<8x8xf32>
    %cst_19 = arith.constant dense<0.000000e+00> : vector<8x8xf32>
    %27 = tpu.matmul %24, %25, %cst_19 {dimension_numbers = #tpu.dot_dimension_numbers<[1], [1], [0], [0], [0, 0, 1, 0], [], []>} : vector<8x8xf32>, vector<8x8xf32>, vector<8x8xf32> -> vector<8x8xf32>
    %cst_20 = arith.constant dense<0xFF800000> : vector<8xf32>
    %28 = vector.multi_reduction <maximumf>, %27, %cst_20 [1] : vector<8x8xf32> to vector<8xf32>
    %29 = vector.shape_cast %28 : vector<8xf32> to vector<8x1xf32>
    %30 = vector.broadcast %29 : vector<8x1xf32> to vector<8x8xf32>
    %31 = arith.subf %27, %30 : vector<8x8xf32>
    %32 = math.exp %31 : vector<8x8xf32>
    %cst_21 = arith.constant dense<0.000000e+00> : vector<8xf32>
    %33 = vector.multi_reduction <add>, %32, %cst_21 [1] : vector<8x8xf32> to vector<8xf32>
    %34 = vector.shape_cast %33 : vector<8xf32> to vector<8x1xf32>
    %35 = tpu.reciprocal %34 {approx = true} : vector<8x1xf32> -> vector<8x1xf32>
    %36 = vector.broadcast %35 : vector<8x1xf32> to vector<8x8xf32>
    %37 = arith.mulf %32, %36 : vector<8x8xf32>
    %c0_22 = arith.constant 0 : index
    %c0_23 = arith.constant 0 : index
    %c0_24 = arith.constant 0 : index
    %c0_25 = arith.constant 0 : index
    %38 = vector.load %arg12[%c0_22, %c0_23, %c0_24, %c0_25] : memref<1x4x8x8xf32, #tpu.memory_space<vmem>>, vector<1x1x8x8xf32>
    %39 = vector.shape_cast %38 : vector<1x1x8x8xf32> to vector<8x8xf32>
    %40 = vector.shape_cast %37 : vector<8x8xf32> to vector<1x1x8x8xf32>
    tpu.vector_store %arg12[%c0_22, %c0_23, %c0_24, %c0_25], %40 {strides = array<i32>} : memref<1x4x8x8xf32, #tpu.memory_space<vmem>>, vector<1x1x8x8xf32>,
    %cst_26 = arith.constant dense<0.000000e+00> : vector<8x8xf32>
    %41 = tpu.matmul %37, %26, %cst_26 {dimension_numbers = #tpu.dot_dimension_numbers<[1], [0], [0], [1], [0, 0, 1, 1], [], []>} : vector<8x8xf32>, vector<8x8xf32>, vector<8x8xf32> -> vector<8x8xf32>
    %42 = vector.extract_strided_slice %21 {offsets = [0, 8], sizes = [8, 8], strides = [1, 1]} : vector<8x32xf32> to vector<8x8xf32>
    %43 = vector.extract_strided_slice %22 {offsets = [0, 8], sizes = [8, 8], strides = [1, 1]} : vector<8x32xf32> to vector<8x8xf32>
    %44 = vector.extract_strided_slice %23 {offsets = [0, 8], sizes = [8, 8], strides = [1, 1]} : vector<8x32xf32> to vector<8x8xf32>
    %cst_27 = arith.constant dense<0.000000e+00> : vector<8x8xf32>
    %45 = tpu.matmul %42, %43, %cst_27 {dimension_numbers = #tpu.dot_dimension_numbers<[1], [1], [0], [0], [0, 0, 1, 0], [], []>} : vector<8x8xf32>, vector<8x8xf32>, vector<8x8xf32> -> vector<8x8xf32>
    %cst_28 = arith.constant dense<0xFF800000> : vector<8xf32>
    %46 = vector.multi_reduction <maximumf>, %45, %cst_28 [1] : vector<8x8xf32> to vector<8xf32>
    %47 = vector.shape_cast %46 : vector<8xf32> to vector<8x1xf32>
    %48 = vector.broadcast %47 : vector<8x1xf32> to vector<8x8xf32>
    %49 = arith.subf %45, %48 : vector<8x8xf32>
    %50 = math.exp %49 : vector<8x8xf32>
    %cst_29 = arith.constant dense<0.000000e+00> : vector<8xf32>
    %51 = vector.multi_reduction <add>, %50, %cst_29 [1] : vector<8x8xf32> to vector<8xf32>
    %52 = vector.shape_cast %51 : vector<8xf32> to vector<8x1xf32>
    %53 = tpu.reciprocal %52 {approx = true} : vector<8x1xf32> -> vector<8x1xf32>
    %54 = vector.broadcast %53 : vector<8x1xf32> to vector<8x8xf32>
    %55 = arith.mulf %50, %54 : vector<8x8xf32>
    %c0_30 = arith.constant 0 : index
    %c1 = arith.constant 1 : index
    %c0_31 = arith.constant 0 : index
    %c0_32 = arith.constant 0 : index
    %56 = vector.load %arg12[%c0_30, %c1, %c0_31, %c0_32] : memref<1x4x8x8xf32, #tpu.memory_space<vmem>>, vector<1x1x8x8xf32>
    %57 = vector.shape_cast %56 : vector<1x1x8x8xf32> to vector<8x8xf32>
    %58 = vector.shape_cast %55 : vector<8x8xf32> to vector<1x1x8x8xf32>
    tpu.vector_store %arg12[%c0_30, %c1, %c0_31, %c0_32], %58 {strides = array<i32>} : memref<1x4x8x8xf32, #tpu.memory_space<vmem>>, vector<1x1x8x8xf32>,
    %cst_33 = arith.constant dense<0.000000e+00> : vector<8x8xf32>
    %59 = tpu.matmul %55, %44, %cst_33 {dimension_numbers = #tpu.dot_dimension_numbers<[1], [0], [0], [1], [0, 0, 1, 1], [], []>} : vector<8x8xf32>, vector<8x8xf32>, vector<8x8xf32> -> vector<8x8xf32>
    %60 = vector.extract_strided_slice %21 {offsets = [0, 16], sizes = [8, 8], strides = [1, 1]} : vector<8x32xf32> to vector<8x8xf32>
    %61 = vector.extract_strided_slice %22 {offsets = [0, 16], sizes = [8, 8], strides = [1, 1]} : vector<8x32xf32> to vector<8x8xf32>
    %62 = vector.extract_strided_slice %23 {offsets = [0, 16], sizes = [8, 8], strides = [1, 1]} : vector<8x32xf32> to vector<8x8xf32>
    %cst_34 = arith.constant dense<0.000000e+00> : vector<8x8xf32>
    %63 = tpu.matmul %60, %61, %cst_34 {dimension_numbers = #tpu.dot_dimension_numbers<[1], [1], [0], [0], [0, 0, 1, 0], [], []>} : vector<8x8xf32>, vector<8x8xf32>, vector<8x8xf32> -> vector<8x8xf32>
    %cst_35 = arith.constant dense<0xFF800000> : vector<8xf32>
    %64 = vector.multi_reduction <maximumf>, %63, %cst_35 [1] : vector<8x8xf32> to vector<8xf32>
    %65 = vector.shape_cast %64 : vector<8xf32> to vector<8x1xf32>
    %66 = vector.broadcast %65 : vector<8x1xf32> to vector<8x8xf32>
    %67 = arith.subf %63, %66 : vector<8x8xf32>
    %68 = math.exp %67 : vector<8x8xf32>
    %cst_36 = arith.constant dense<0.000000e+00> : vector<8xf32>
    %69 = vector.multi_reduction <add>, %68, %cst_36 [1] : vector<8x8xf32> to vector<8xf32>
    %70 = vector.shape_cast %69 : vector<8xf32> to vector<8x1xf32>
    %71 = tpu.reciprocal %70 {approx = true} : vector<8x1xf32> -> vector<8x1xf32>
    %72 = vector.broadcast %71 : vector<8x1xf32> to vector<8x8xf32>
    %73 = arith.mulf %68, %72 : vector<8x8xf32>
    %c0_37 = arith.constant 0 : index
    %c2 = arith.constant 2 : index
    %c0_38 = arith.constant 0 : index
    %c0_39 = arith.constant 0 : index
    %74 = vector.load %arg12[%c0_37, %c2, %c0_38, %c0_39] : memref<1x4x8x8xf32, #tpu.memory_space<vmem>>, vector<1x1x8x8xf32>
    %75 = vector.shape_cast %74 : vector<1x1x8x8xf32> to vector<8x8xf32>
    %76 = vector.shape_cast %73 : vector<8x8xf32> to vector<1x1x8x8xf32>
    tpu.vector_store %arg12[%c0_37, %c2, %c0_38, %c0_39], %76 {strides = array<i32>} : memref<1x4x8x8xf32, #tpu.memory_space<vmem>>, vector<1x1x8x8xf32>,
    %cst_40 = arith.constant dense<0.000000e+00> : vector<8x8xf32>
    %77 = tpu.matmul %73, %62, %cst_40 {dimension_numbers = #tpu.dot_dimension_numbers<[1], [0], [0], [1], [0, 0, 1, 1], [], []>} : vector<8x8xf32>, vector<8x8xf32>, vector<8x8xf32> -> vector<8x8xf32>
    %78 = vector.extract_strided_slice %21 {offsets = [0, 24], sizes = [8, 8], strides = [1, 1]} : vector<8x32xf32> to vector<8x8xf32>
    %79 = vector.extract_strided_slice %22 {offsets = [0, 24], sizes = [8, 8], strides = [1, 1]} : vector<8x32xf32> to vector<8x8xf32>
    %80 = vector.extract_strided_slice %23 {offsets = [0, 24], sizes = [8, 8], strides = [1, 1]} : vector<8x32xf32> to vector<8x8xf32>
    %cst_41 = arith.constant dense<0.000000e+00> : vector<8x8xf32>
    %81 = tpu.matmul %78, %79, %cst_41 {dimension_numbers = #tpu.dot_dimension_numbers<[1], [1], [0], [0], [0, 0, 1, 0], [], []>} : vector<8x8xf32>, vector<8x8xf32>, vector<8x8xf32> -> vector<8x8xf32>
    %cst_42 = arith.constant dense<0xFF800000> : vector<8xf32>
    %82 = vector.multi_reduction <maximumf>, %81, %cst_42 [1] : vector<8x8xf32> to vector<8xf32>
    %83 = vector.shape_cast %82 : vector<8xf32> to vector<8x1xf32>
    %84 = vector.broadcast %83 : vector<8x1xf32> to vector<8x8xf32>
    %85 = arith.subf %81, %84 : vector<8x8xf32>
    %86 = math.exp %85 : vector<8x8xf32>
    %cst_43 = arith.constant dense<0.000000e+00> : vector<8xf32>
    %87 = vector.multi_reduction <add>, %86, %cst_43 [1] : vector<8x8xf32> to vector<8xf32>
    %88 = vector.shape_cast %87 : vector<8xf32> to vector<8x1xf32>
    %89 = tpu.reciprocal %88 {approx = true} : vector<8x1xf32> -> vector<8x1xf32>
    %90 = vector.broadcast %89 : vector<8x1xf32> to vector<8x8xf32>
    %91 = arith.mulf %86, %90 : vector<8x8xf32>
    %c0_44 = arith.constant 0 : index
    %c3 = arith.constant 3 : index
    %c0_45 = arith.constant 0 : index
    %c0_46 = arith.constant 0 : index
    %92 = vector.load %arg12[%c0_44, %c3, %c0_45, %c0_46] : memref<1x4x8x8xf32, #tpu.memory_space<vmem>>, vector<1x1x8x8xf32>
    %93 = vector.shape_cast %92 : vector<1x1x8x8xf32> to vector<8x8xf32>
    %94 = vector.shape_cast %91 : vector<8x8xf32> to vector<1x1x8x8xf32>
    tpu.vector_store %arg12[%c0_44, %c3, %c0_45, %c0_46], %94 {strides = array<i32>} : memref<1x4x8x8xf32, #tpu.memory_space<vmem>>, vector<1x1x8x8xf32>,
    %cst_47 = arith.constant dense<0.000000e+00> : vector<8x8xf32>
    %95 = tpu.matmul %91, %80, %cst_47 {dimension_numbers = #tpu.dot_dimension_numbers<[1], [0], [0], [1], [0, 0, 1, 1], [], []>} : vector<8x8xf32>, vector<8x8xf32>, vector<8x8xf32> -> vector<8x8xf32>
    %96 = tpu.concatenate %41, %59, %77, %95 in 1 : vector<8x8xf32>, vector<8x8xf32>, vector<8x8xf32>, vector<8x8xf32> -> vector<8x32xf32>
    %c0_48 = arith.constant 0 : index
    %c0_49 = arith.constant 0 : index
    %97 = vector.load %arg13[%c0_48, %c0_49] : memref<8x32xf32, #tpu.memory_space<vmem>>, vector<8x32xf32>
    %cst_50 = arith.constant dense<0.000000e+00> : vector<8x32xf32>
    %98 = tpu.matmul %96, %20, %cst_50 {dimension_numbers = #tpu.dot_dimension_numbers<[1], [0], [0], [1], [0, 0, 1, 1], [], []>} : vector<8x32xf32>, vector<32x32xf32>, vector<8x32xf32> -> vector<8x32xf32>
    %99 = arith.addf %97, %98 : vector<8x32xf32>
    %c0_51 = arith.constant 0 : index
    %c0_52 = arith.constant 0 : index
    %100 = vector.load %arg13[%c0_51, %c0_52] : memref<8x32xf32, #tpu.memory_space<vmem>>, vector<8x32xf32>
    tpu.vector_store %arg13[%c0_51, %c0_52], %99 {strides = array<i32>} : memref<8x32xf32, #tpu.memory_space<vmem>>, vector<8x32xf32>,
    %c0_i32_53 = arith.constant 0 : i32
    %101 = arith.cmpi eq, %arg2, %c0_i32_53 : i32
    %102 = arith.extui %101 : i1 to i32
    %c0_i32_54 = arith.constant 0 : i32
    %103 = arith.cmpi ne, %102, %c0_i32_54 : i32
    scf.if %103 {
      %c0_55 = arith.constant 0 : index
      %c0_56 = arith.constant 0 : index
      %104 = vector.load %arg13[%c0_55, %c0_56] : memref<8x32xf32, #tpu.memory_space<vmem>>, vector<8x32xf32>
      %c0_57 = arith.constant 0 : index
      %c0_58 = arith.constant 0 : index
      %105 = vector.load %arg10[%c0_57, %c0_58] : memref<1x32xf32, #tpu.memory_space<vmem>>, vector<1x32xf32>
      %106 = vector.broadcast %105 : vector<1x32xf32> to vector<8x32xf32>
      %107 = arith.addf %104, %106 : vector<8x32xf32>
      %c0_59 = arith.constant 0 : index
      %c0_60 = arith.constant 0 : index
      %c0_61 = arith.constant 0 : index
      %108 = vector.load %arg11[%c0_59, %c0_60, %c0_61] : memref<1x8x32xf32, #tpu.memory_space<vmem>>, vector<1x8x32xf32>
      %109 = vector.shape_cast %108 : vector<1x8x32xf32> to vector<8x32xf32>
      %110 = vector.shape_cast %107 : vector<8x32xf32> to vector<1x8x32xf32>
      tpu.vector_store %arg11[%c0_59, %c0_60, %c0_61], %110 {strides = array<i32>} : memref<1x8x32xf32, #tpu.memory_space<vmem>>, vector<1x8x32xf32>,
    } else {
    }
    return
  }
  func.func @transform_0(%arg0: i32, %arg1: i32, %arg2: i32) -> (i32, i32, i32) {
    %c0_i32 = arith.constant 0 : i32
    %c0_i32_0 = arith.constant 0 : i32
    return %arg0, %arg1, %c0_i32 : i32, i32, i32
  }
  func.func @transform_1(%arg0: i32, %arg1: i32, %arg2: i32) -> (i32, i32, i32) {
    %c0_i32 = arith.constant 0 : i32
    %c0_i32_0 = arith.constant 0 : i32
    %c0_i32_1 = arith.constant 0 : i32
    return %arg0, %c0_i32, %c0_i32_0 : i32, i32, i32
  }
  func.func @transform_2(%arg0: i32, %arg1: i32, %arg2: i32) -> (i32, i32, i32) {
    %c0_i32 = arith.constant 0 : i32
    %c0_i32_0 = arith.constant 0 : i32
    %c0_i32_1 = arith.constant 0 : i32
    return %arg0, %c0_i32, %c0_i32_0 : i32, i32, i32
  }
  func.func @transform_3(%arg0: i32, %arg1: i32, %arg2: i32) -> (i32, i32, i32) {
    %c0_i32 = arith.constant 0 : i32
    %c0_i32_0 = arith.constant 0 : i32
    %c0_i32_1 = arith.constant 0 : i32
    %c0_i32_2 = arith.constant 0 : i32
    return %c0_i32, %c0_i32_0, %c0_i32_1 : i32, i32, i32
  }
  func.func @transform_4(%arg0: i32, %arg1: i32, %arg2: i32) -> (i32, i32, i32) {
    %c0_i32 = arith.constant 0 : i32
    %c0_i32_0 = arith.constant 0 : i32
    %c0_i32_1 = arith.constant 0 : i32
    %c0_i32_2 = arith.constant 0 : i32
    return %c0_i32, %c0_i32_0, %c0_i32_1 : i32, i32, i32
  }
  func.func @transform_5(%arg0: i32, %arg1: i32, %arg2: i32) -> (i32, i32, i32) {
    %c0_i32 = arith.constant 0 : i32
    %c0_i32_0 = arith.constant 0 : i32
    %c0_i32_1 = arith.constant 0 : i32
    %c0_i32_2 = arith.constant 0 : i32
    return %c0_i32, %c0_i32_0, %c0_i32_1 : i32, i32, i32
  }
  func.func @transform_6(%arg0: i32, %arg1: i32, %arg2: i32) -> (i32, i32, i32) {
    %c0_i32 = arith.constant 0 : i32
    %c0_i32_0 = arith.constant 0 : i32
    %c0_i32_1 = arith.constant 0 : i32
    %c0_i32_2 = arith.constant 0 : i32
    return %c0_i32, %c0_i32_0, %c0_i32_1 : i32, i32, i32
  }
  func.func @transform_7(%arg0: i32, %arg1: i32, %arg2: i32) -> (i32, i32) {
    %c0_i32 = arith.constant 0 : i32
    %c0_i32_0 = arith.constant 0 : i32
    %c0_i32_1 = arith.constant 0 : i32
    return %c0_i32, %c0_i32_0 : i32, i32
  }
  func.func @transform_8(%arg0: i32, %arg1: i32, %arg2: i32) -> (i32, i32, i32) {
    %c0_i32 = arith.constant 0 : i32
    %c0_i32_0 = arith.constant 0 : i32
    return %arg0, %arg1, %c0_i32 : i32, i32, i32
  }
  func.func @transform_9(%arg0: i32, %arg1: i32, %arg2: i32) -> (i32, i32, i32, i32) {
    %c0_i32 = arith.constant 0 : i32
    %c0_i32_0 = arith.constant 0 : i32
    return %arg0, %arg2, %arg1, %c0_i32 : i32, i32, i32, i32
  }
}

</mosaic_0001>

<bundles_post_ra>
// kernel: multi_head_attention.1
= control target key start
LH: loop header
LB: loop body
LE: loop exit
PB: predicated region body
PF: predicated region fallthrough
CT: control target
= control target key end

     0   :  { %s2697_s0 = inlined_call_operand.hbm [shape: f32[2,8,32], index: 0, kind: input, shape index: {}]   ;;  %s2698_s1 = inlined_call_operand.hbm [shape: f32[2,8,32], index: 1, kind: input, shape index: {}]   ;;  %s2699_s2 = inlined_call_operand.hbm [shape: f32[2,8,32], index: 2, kind: input, shape index: {}]   ;;  %s2700_s3 = inlined_call_operand.vmem [shape: f32[1,32,32], index: 3, kind: input, shape index: {}]   ;;  %s2701_s4 = inlined_call_operand.vmem [shape: f32[1,32,32], index: 4, kind: input, shape index: {}]   ;;  %s2702_s5 = inlined_call_operand.vmem [shape: f32[1,32,32], index: 5, kind: input, shape index: {}]   ;;  %s2703_s6 = inlined_call_operand.hbm [shape: f32[1,32,32], index: 6, kind: input, shape index: {}]   ;;  %s2704_s7 = inlined_call_operand.vmem [shape: f32[1,32], index: 7, kind: input, shape index: {}]   ;;  %s2705_s8 = inlined_call_operand.hbm [shape: f32[2,8,32], index: 8, kind: output, shape index: {0}]   ;;  %s2706_s9 = inlined_call_operand.hbm [shape: f32[2,4,8,8], index: 9, kind: output, shape index: {1}]  }
   0x1   :  { %2717 = sst [smem:[#allocation25_spill]] %s2698_s1 }
   0x2   :  { %2718 = sst [smem:[#allocation26_spill]] %s2704_s7 }
   0x3   :  { %2719 = sst [smem:[#allocation27_spill]] %s2705_s8 }
   0x4   :  { %15 = vsyncpa [#allocation4], 0 }
   0x5   :  { %17 = vsyncpa [#allocation4 + $0x1], 0 }
   0x6   :  { %18 = vsyncpa [#allocation7], 0 }
   0x7   :  { %20 = vsyncpa [#allocation7 + $0x1], 0 }
   0x8   :  { %21 = vsyncpa [#allocation10], 0 }
   0x9   :  { %22 = vsyncpa [#allocation5], 0 }
   0xa   :  { %24 = vsyncpa [#allocation5 + $0x1], 0 }
   0xb   :  { %25 = vsyncpa [#allocation13], 0 }
   0xc   :  { %27 = vsyncpa [#allocation13 + $0x1], 0  ;;  %s2291_s30 = smov 0   ;;  %s2293_s10 = smov 0  }
   0xd   :  { %s2295_s11 = smov 0   ;;  %s2297_s12 = smov 0  }
   0xe   :  { %s2299_s13 = smov 0   ;;  %s2301_s14 = smov 0  }
   0xf LB: > { %2720 = sst [smem:[#allocation19_spill]] %s2202_s30  ;;  %s52_s15 = sadd.s32 1, %s2218_s13  ;;  %s2222_s14 = sphi %s2301_s14, %s33_s14   ;;  %s2218_s13 = sphi %s2299_s13, %s2747_s13   ;;  %s2214_s12 = sphi %s2297_s12, %s2746_s12   ;;  %s2210_s11 = sphi %s2295_s11, %s2750_s11   ;;  %s2206_s10 = sphi %s2293_s10, %s2749_s10   ;;  %s2202_s30 = sphi %s2291_s30, %s2748_s30  }
  0x10   : > { %2721 = sst [smem:[#allocation20_spill]] %s2218_s13  ;;  %s61_s16 = sadd.s32 1, %s2210_s11 }
  0x11   : > { %2722 = sst [smem:[#allocation21_spill]] %s2222_s14  ;;  %p54_p0 = scmp.ge.s32.totalorder %s52_s15, 2 }
  0x12   : > { %p68_p1 = scmp.ne.s32.totalorder %s2210_s11, %s2206_s10  ;;  %p69_p2 = scmp.eq.s32.totalorder %s2222_s14, 0 }
  0x13   : > { %s2752_s15 = smov (%p54_p0, %s52_s15), 0  ;;  %p1915_p5 = scmp.lt.s32.totalorder %s2222_s14, 2 }
  0x14   : > { %2723 = sst [smem:[#allocation22_spill]] %s2752_s15  ;;  %p70_p4 = por %p69_p2, %p68_p1 }
  0x15   : > { %s56_s17 = ssub.s32 %s2218_s13, %s2752_s15  ;;  %s2707_s18 = sand.u32 1, %s2210_s11  }
  0x16   : > { %p59_p6 = scmp.eq.s32.totalorder %s56_s17, 0  ;;  %s2338_s19 = sshll.u32 %s2707_s18, 3 }
  0x17   : > { %s2341_s20 = sshll.u32 %s2218_s13, 7  ;;  %p2343_p7 = pnand %p1915_p5, %p70_p4 }
  0x18   : > { %s2348_s22 = scalar_select %p59_p6, %s2210_s11, %s61_s16  }
  0x19   : > { %s357_s23 = sand.u32 1, %s2222_s14   ;;  %s2726_s1 = sld [smem:[#allocation25_spill]] }
  0x1a   : > { %2725 = sst [smem:[#allocation23_spill]] %s2348_s22  ;;  %s361_s27 = scalar_lea.vmem [#allocation6], %s2338_s19 }
  0x1b   : > { %s368_s28 = sshll.u32 %s361_s27, 4  ;;  %s2356_s29 = scalar_lea.sflag [#allocation7], %s357_s23  ;;  %s369_s28 = int_to_ptr.vmem [resolvable:$true] %s368_s28 }
  0x1c   : > { %p2711_p8 = pneg %p2343_p7  ;;  %s2007_s17 = scalar_lea.vmem %s369_s28, 128 }
  0x1d   : > { %p2008_p9 = scmp.ne.s32.totalorder %s369_s28, %s2007_s17  ;;  %s2224_s16 = smov [#allocation6]  }
  0x1e   : > { %s2012_s18 = sshll.u32 %s2224_s16, 4  ;;  %s2013_s18 = int_to_ptr.vmem [resolvable:$false] %s2012_s18 }
  0x1f   : > { %s366_s26 = scalar_lea.hbm %s2726_s1, %s2341_s20  ;;  %p2010_p10 = pnand %p2008_p9, %p2711_p8 }
  0x20   : > { %s2014_s15 = scalar_lea.vmem %s2013_s18, 256  ;;  %p2015_p12 = scmp.lt.s32.totalorder %s369_s28, %s2013_s18 }
  0x21   : > { %p2011_p11 = pneg %p2010_p10  ;;  %p2016_p13 = scmp.lt.s32.totalorder %s2014_s15, %s2007_s17 }
  0x23   : > { %p2017_p0 = por %p2016_p13, %p2015_p12 }
  0x25   : > { %p2018_p2 = pnand %p2017_p0, %p2011_p11 }
  0x27   : > { %2021 = shalt.err (!%p2018_p2)
}
  0x28   : > { %1903 = dma.hbm_to_vmem [thread:$0]  (!%p2343_p7), %s366_s26, 128, %s369_s28, %s2356_s29  }
  0x29   : > { %s2367_s23 = sadd.s32 4294967295, %s2222_s14   ;;  %s1714_s15 = sadd.s32 4294967294, %s2222_s14  }
  0x2a   : > { %p74_p4 = scmp.ne.s32.totalorder %s2206_s10, %s2202_s30  ;;  %p2710_p5 = scmp.eq.s32.totalorder %s2367_s23, 0 }
  0x2b   : > { %p257_p6 = scmp.eq.s32.totalorder %s2367_s23, 1  ;;  %p263_p9 = scmp.eq.s32.totalorder %s1714_s15, 1 }
  0x2c   : > { %p1715_p10 = scmp.ge.s32.totalorder %s2222_s14, 1  ;;  %p2377_p11 = por %p2710_p5, %p74_p4 }
  0x2d   : > { %p2384_p12 = por %p257_p6, %p68_p1  ;;  %p2388_p13 = por %p263_p9, %p74_p4 }
  0x2e   : > { %p300_p0 = scmp.lt.s32.totalorder %s2222_s14, 3  ;;  %s2225_s27 = smov [#allocation9]  }
  0x2f   : > { %s2729_s25 = scalar_select %p2388_p13, 1, 0 }
  0x30   : > { %p2393_p2 = pnand %p1715_p10, %p300_p0  ;;  %s321_s28 = sshll.u32 %s2225_s27, 4  ;;  %s322_s28 = int_to_ptr.vmem [resolvable:$true] %s321_s28 }
  0x31   : > { %2730 = sst [smem:[#allocation24_spill]] %s2729_s25  ;;  %s342_s13 = scalar_lea.vmem [#allocation3], %s2338_s19 }
  0x32   : > { %p1893_p3 = pneg %p2393_p2  ;;  %s350_s22 = sshll.u32 %s342_s13, 4  ;;  %s2410_s22 = int_to_ptr.vmem [resolvable:$true] %s350_s22 }
  0x33   : > { %s2033_s27 = scalar_lea.vmem %s322_s28, 512  ;;  %p2041_p0 = scmp.lt.s32.totalorder %s322_s28, %s322_s28 }
  0x34   : > { %p2401_p1 = pnand %p1893_p3, %p2710_p5  ;;  %p2034_p6 = scmp.ne.s32.totalorder %s322_s28, %s2033_s27 }
  0x35   : > { %p2042_p3 = scmp.lt.s32.totalorder %s2033_s27, %s2033_s27 }
  0x36   : > { %p2024_p4 = pneg %p2401_p1 }
  0x37   : > { %p2043_p5 = por %p2042_p3, %p2041_p0 }
  0x38   : > { %p2036_p9 = pnand %p2034_p6, %p2024_p4 }
  0x3a   : > { %p2037_p10 = pneg %p2036_p9 }
  0x3c   : > { %p2044_p8 = pnand %p2043_p5, %p2037_p10 }
  0x3e   : > { %2047 = shalt.err (!%p2044_p8)
}
  0x3f   : > { %s2226_s14 = smov 128   ;;  %s2227_s13 = smov 8  }
  0x40   : > { %1896 = dma.hbm_to_vmem [thread:$0]  (!%p2401_p1), %s2703_s6, 512, %s322_s28, [#allocation10], %s2226_s14, %s2226_s14, %s2227_s13  }
  0x41   : > { %s2733_s1 = sand.u32 1, %s2210_s11   ;;  %s2061_s30 = scalar_lea.vmem %s2410_s22, 128 }
  0x42   : > { %s339_s25 = scalar_lea.sflag [#allocation4], %s2733_s1  ;;  %p2062_p4 = scmp.ne.s32.totalorder %s2410_s22, %s2061_s30 }
  0x43   : > { %p2734_p5 = pneg %p2343_p7  ;;  %s2228_s27 = smov [#allocation3]  }
  0x44   : > { %s2066_s8 = sshll.u32 %s2228_s27, 4  ;;  %s2067_s8 = int_to_ptr.vmem [resolvable:$false] %s2066_s8 }
  0x45   : > { %p2064_p8 = pnand %p2062_p4, %p2734_p5  ;;  %s2068_s7 = scalar_lea.vmem %s2067_s8, 256 }
  0x46   : > { %p2069_p9 = scmp.lt.s32.totalorder %s2410_s22, %s2067_s8  ;;  %p2070_p10 = scmp.lt.s32.totalorder %s2068_s7, %s2061_s30 }
  0x47   : > { %p2065_p6 = pneg %p2064_p8 }
  0x48   : > { %p2071_p0 = por %p2070_p10, %p2069_p9 }
  0x4a   : > { %p2072_p3 = pnand %p2071_p0, %p2065_p6 }
  0x4c   : > { %2075 = shalt.err (!%p2072_p3)
}
  0x4d   : > { %s2735_s28 = scalar_lea.hbm %s2697_s0, %s2341_s20  ;;  %s384_s8 = scalar_lea.hbm %s2699_s2, %s2341_s20 }
  0x4e   : > { %1900 = dma.hbm_to_vmem [thread:$0]  (!%p2343_p7), %s2735_s28, 128, %s2410_s22, %s339_s25  }
  0x4f   : > { %s379_s7 = scalar_lea.vmem [#allocation8], %s2338_s19  ;;  %p2736_p4 = pmov %p2734_p5 }
  0x50   : > { %s386_s30 = sshll.u32 %s379_s7, 4  ;;  %s2229_s15 = smov [#allocation8]   ;;  %s387_s30 = int_to_ptr.vmem [resolvable:$true] %s386_s30 }
  0x51   : > { %s2089_s16 = scalar_lea.vmem %s387_s30, 128  ;;  %s2094_s27 = sshll.u32 %s2229_s15, 4  ;;  %s2095_s27 = int_to_ptr.vmem [resolvable:$false] %s2094_s27 }
  0x52   : > { %p2090_p1 = scmp.ne.s32.totalorder %s387_s30, %s2089_s16  ;;  %s2096_s14 = scalar_lea.vmem %s2095_s27, 256 }
  0x53   : > { %p2097_p6 = scmp.lt.s32.totalorder %s387_s30, %s2095_s27  ;;  %p2098_p9 = scmp.lt.s32.totalorder %s2096_s14, %s2089_s16 }
  0x54   : > { %p2092_p5 = pnand %p2090_p1, %p2736_p4 }
  0x55   : > { %p2099_p10 = por %p2098_p9, %p2097_p6 }
  0x56   : > { %p2093_p8 = pneg %p2092_p5 }
  0x58   : > { %p2100_p0 = pnand %p2099_p10, %p2093_p8 }
  0x5a   : > { %2103 = shalt.err (!%p2100_p0)
}
  0x5b   : > { %1906 = dma.hbm_to_vmem [thread:$0]  (!%p2343_p7), %s384_s8, 128, %s387_s30, %s2356_s29  }
  0x5c   : > { %395 = sbr.rel (%p2393_p2) target bundleno = 1916 (0x77c), region = 52  ;;  %s2449_s19 = sand.u32 (!%p2393_p2), 1, %s2206_s10  }
  0x5d   : > { %s2452_s20 = sshll.u32 (!%p2393_p2), %s2449_s19, 3  ;;  %s398_s22 = scalar_lea.sflag (!%p2393_p2), [#allocation4], %s2449_s19 }
  0x5e   : > { %s401_s25 = scalar_lea.vmem (!%p2393_p2), [#allocation3], %s2452_s20 }
  0x61   : > { %2181 = dma.done.wait (%p2377_p11), %s398_s22, 128  }
  0x62   : > { %2183 = vsyncadd (%p2377_p11), %s398_s22, 4294967168  ;;  %s406_s21 = sand.u32 1, %s2367_s23   ;;  %s410_s26 = scalar_lea.vmem [#allocation6], %s2452_s20 }
  0x63   : > { %s407_s29 = scalar_lea.sflag [#allocation7], %s406_s21 }
  0x64   : > { %2185 = dma.done.wait (%p2377_p11), %s407_s29, 256  }
  0x65   : > { %2187 = vsyncadd (%p2377_p11), %s407_s29, 4294967040  ;;  %s419_s1 = scalar_lea.vmem [#allocation8], %s2452_s20  ;;  %p2737_p7 = scmp.eq.s32.totalorder %s2367_s23, 0 }
  0x67   : > { %2189 = dma.done.wait (%p2737_p7), [#allocation10], 512   ;;  %p2738_p2 = pmov %p2737_p7 }
  0x68   : > { %vm478_vm0 = vcmask 261120   ;;  %v2230_v0 = vmov 0.0   ;;  %vm2231_vm1 = vmmov 0   ;;  %v493_v1 = vld [vmem:[%s2701_s4 + $0x18] sm:$0xff]  ;;  %v492_v3 = vld [vmem:[%s2701_s4 + $0x10] sm:$0xff]  ;;  %v491_v5 = vld [vmem:[%s2701_s4 + $0x8] sm:$0xff] }
  0x69   : > { %2191 = vsyncadd (%p2738_p2), [#allocation10], 4294966784  ;;  %1806 = vmatprep.subr.mxu1 %v2230_v0  ;;  %1795 = vmatprep.subr.mxu0 %v2230_v0  ;;  %479 = vst.msk [vmem:[#allocation2] sm:$0xff] %vm478_vm0, %v2230_v0  ;;  %v488_v2 = vld [vmem:[%s2700_s3 + $0x18] sm:$0xff]  ;;  %v487_v4 = vld [vmem:[%s2700_s3 + $0x10] sm:$0xff]  ;;  %vm724_vm2 = vcmask 64512  }
  0x6a   : > { %1814 = vmatprep.mubr.msk.f32.mxu1 %vm2231_vm1, %v2230_v0  ;;  %1803 = vmatprep.mubr.msk.f32.mxu0 %vm2231_vm1, %v2230_v0  ;;  %v486_v6 = vld [vmem:[%s2700_s3 + $0x8] sm:$0xff]  ;;  %v490_v7 = vld [vmem:[%s2701_s4] sm:$0xff]  ;;  %s2234_s28 = smov 104   ;;  %v498_v15 = vld [vmem:[%s2702_s5 + $0x18] sm:$0xff]  ;;  %s2235_s14 = smov 8   ;;  %vm1401_vm3 = vcmask 130048  }
  0x6b   : > { %1807 = vmatpush3.msra.mxu1 %v493_v1  ;;  %1796 = vmatpush3.msra.mxu0 %v488_v2  ;;  %v485_v8 = vld [vmem:[%s2700_s3] sm:$0xff]  ;;  %v480_v10 = vld [vmem:[%s401_s25] sm:$0xff]  ;;  %s2232_s25 = smov 120   ;;  %s2236_s22 = smov 16   ;;  %vm1403_vm4 = vcmask 195584  }
  0x6c   : > { %1808 = vmatprep.subr.mxu1 %v2230_v0  ;;  %1797 = vmatprep.subr.mxu0 %v2230_v0  ;;  %v481_v9 = vld [vmem:[%s410_s26] sm:$0xff]  ;;  %s2233_s26 = smov 112   ;;  %v497_v16 = vld [vmem:[%s2702_s5 + $0x10] sm:$0xff]  ;;  %v496_v17 = vld [vmem:[%s2702_s5 + $0x8] sm:$0xff]  ;;  %s2237_s21 = smov 24  }
  0x6d   : > { %1809 = vmatpush3.msra.mxu1 %v492_v3  ;;  %1798 = vmatpush3.msra.mxu0 %v487_v4  ;;  %v495_v18 = vld [vmem:[%s2702_s5] sm:$0xff]  ;;  %v482_v19 = vld [vmem:[%s419_s1] sm:$0xff]  ;;  %s1730_s1 = sshll.u32 %s2449_s19, 5  ;;  %s1758_s29 = sshll.u32 %s2214_s12, 9 }
  0x6e   : > { %1810 = vmatprep.subr.mxu1 %v2230_v0  ;;  %1799 = vmatprep.subr.mxu0 %v2230_v0  ;;  %s2570_s27 = scalar_lea.vmem [#allocation12], %s1730_s1  ;;  %s1500_s23 = scalar_lea.sflag [#allocation13], %s2449_s19 }
  0x6f   : > { %1811 = vmatpush3.msra.mxu1 %v491_v5  ;;  %1800 = vmatpush3.msra.mxu0 %v486_v6  ;;  %s1530_s18 = sshll.u32 %s2570_s27, 4  ;;  %s2238_s13 = smov [#allocation12]   ;;  %s2625_s18 = int_to_ptr.vmem [resolvable:$true] %s1530_s18 }
  0x70   : > { %1812 = vmatprep.subr.mxu1 %v2230_v0  ;;  %1801 = vmatprep.subr.mxu0 %v2230_v0  ;;  %s2104_s17 = scalar_lea.vmem %s2625_s18, 512  ;;  %s2108_s8 = sshll.u32 %s2238_s13, 4  ;;  %s2109_s8 = int_to_ptr.vmem [resolvable:$false] %s2108_s8 }
  0x71   : > { %1813 = vmatpush3.msra.mxu1 %v490_v7  ;;  %1802 = vmatpush3.msra.mxu0 %v485_v8  ;;  %p2105_p11 = scmp.ne.s32.totalorder %s2625_s18, %s2104_s17  ;;  %s2110_s7 = scalar_lea.vmem %s2109_s8, 1024 }
  0x72   : > { %1815 = vmatmul.mubr.msk.f32.vlgmr.msra.gmra.mxu1 %vm478_vm0, %v481_v9  ;;  %1804 = vmatmul.mubr.msk.f32.vlgmr.msra.gmra.mxu0 %vm478_vm0, %v480_v10  ;;  %p2111_p4 = scmp.lt.s32.totalorder %s2625_s18, %s2109_s8  ;;  %p2112_p5 = scmp.lt.s32.totalorder %s2110_s7, %s2104_s17 }
  0x73   : > { %1828 = vmatprep.subr.mxu1 %v2230_v0  ;;  %1830 = vmatprep.mubr.msk.f32.mxu1 %vm2231_vm1, %v2230_v0  ;;  %p2106_p3 = pnand %p2105_p11, %p2384_p12 }
  0x74   : > { %1817 = vmatprep.subr.mxu0 %v2230_v0  ;;  %1825 = vmatprep.mubr.msk.f32.mxu0 %vm2231_vm1, %v2230_v0  ;;  %p2113_p8 = por %p2112_p5, %p2111_p4 }
  0x75   : > { %1818 = vmatpush3.msra.mxu0 %v498_v15  ;;  %v502_v15 = vld [vmem:[#allocation9 + $0x10] sm:$0xff]  ;;  %p2107_p1 = pneg %p2106_p3 }
  0x76   : > { %1819 = vmatprep.subr.mxu0 %v2230_v0 }
  0x77   : > { %1820 = vmatpush3.msra.mxu0 %v497_v16  ;;  %v501_v16 = vld [vmem:[#allocation9 + $0x8] sm:$0xff]  ;;  %p2114_p6 = pnand %p2113_p8, %p2107_p1 }
  0x78   : > { %1821 = vmatprep.subr.mxu0 %v2230_v0 }
  0x79   : > { %1822 = vmatpush3.msra.mxu0 %v496_v17  ;;  %v500_v17 = vld [vmem:[#allocation9] sm:$0xff] }
  0x7a   : > { %1823 = vmatprep.subr.mxu0 %v2230_v0 }
  0x7b   : > { %1824 = vmatpush3.msra.mxu0 %v495_v18 }
  0x7c   : > { %1826 = vmatmul.mubr.msk.f32.vlgmr.msra.gmra.mxu0 %vm478_vm0, %v482_v19  ;;  %1848 = vmatprep.subr.mxu0 %v2230_v0 }
  0x7d   : > { %1850 = vmatprep.mubr.msk.f32.mxu0 %vm2231_vm1, %v2230_v0 }
 0x132   : > { %v647_v11 = vpop.f32.mrf.mxu1  ;;  %v574_v12 = vpop.f32.mrf.mxu0 }
 0x133   : > { %888 = vrot.lane.b32.xlu1 %v647_v11, %s2232_s25  ;;  %1829 = vmatpush3.xpose.msk.msra.mxu1 %vm724_vm2, %v647_v11 }
 0x134   : > { %v1816_v13 = vpop.f32.mrf.mxu1  ;;  %v1805_v14 = vpop.f32.mrf.mxu0  ;;  %1833 = vmatprep.subr.mxu1 %v2230_v0 }
 0x135   : > { %v503_v14 = vld [vmem:[#allocation9 + $0x18] sm:$0xff] }
 0x136   : > { %1831 = vmatmul.mubr.msk.f32.vlgmr.msra.gmra.mxu1 %vm724_vm2, %v574_v12 }
 0x137   : > { %886 = vrot.lane.b32.xlu1 %v574_v12, %s2232_s25  ;;  %1835 = vmatprep.mubr.msk.f32.mxu1 %vm2231_vm1, %v2230_v0 }
 0x13b   : > { %1054 = vrot.lane.b32.xlu1 %v574_v12, %s2233_s26 }
 0x13c   : > { %v2554_v28 = vpop.f32.mrf.mxu0 }
 0x13d   : > { %1834 = vmatpush3.msra.mxu1 %v2554_v28 }
 0x13e   : > { %v1827_v29 = vpop.f32.mrf.mxu0  ;;  %1838 = vmatprep.subr.mxu1 %v2230_v0 }
 0x13f   : > { %1223 = vrot.lane.b32.xlu1 %v647_v11, %s2234_s28 }
 0x143   : > { %1221 = vrot.lane.b32.xlu1 %v574_v12, %s2234_s28 }
 0x1a5   : > { %v889_v30 = vpop.permute.xlu1 %888 }
 0x1a9   : > { %v887_v31 = vpop.permute.xlu1 %886 }
 0x1ad   : > { %v1055_v32 = vpop.permute.xlu1 %1054 }
 0x1b1   : > { %v1224_v35 = vpop.permute.xlu1 %1223 }
 0x1b5   : > { %v1222_v36 = vpop.permute.xlu1 %1221 }
 0x1f6   : > { %v797_v20 = vpop.f32.mrf.mxu1 }
 0x1f7   : > { %v801_v21 = vsel %vm724_vm2, %v797_v20, -inf }
 0x1f8   : > { %802 = vmax.xlane.f32.xlu0 %v801_v21  ;;  %v1832_v22 = vpop.f32.mrf.mxu1 }
 0x281   : > { %v803_v23 = vpop.xlane.xlu0 %802 }
 0x282   : > { %v804_v24 = vsub.f32 %v797_v20, %v803_v23 }
 0x284   : > { %v805_v25 = vmul.f32 1.442695, %v804_v24 }
 0x286   : > { %1978 = vpow2.f32 %v805_v25 }
 0x293   : > { %v1979_v26 = vpop.eup %1978 }
 0x294   : > { %v807_v27 = vsel %vm724_vm2, %v1979_v26, 0.0 }
 0x295   : > { %808 = vadd.xlane.f32.xlu0 %v807_v27 }
 0x2ab   : > { %1056 = vrot.lane.b32.xlu0 %v647_v11, %s2233_s26 }
 0x31e   : > { %v809_v33 = vpop.xlane.xlu0 %808 }
 0x31f   : > { %1980 = vrcp.f32 %v809_v33 }
 0x322   : > { %v1057_v34 = vpop.permute.xlu0 %1056 }
 0x323   : > { %1849 = vmatpush3.xpose.msk.msra.mxu0 %vm724_vm2, %v1057_v34 }
 0x324   : > { %1858 = vmatprep.subr.mxu0 %v2230_v0 }
 0x326   : > { %1851 = vmatmul.mubr.msk.f32.vlgmr.msra.gmra.mxu0 %vm724_vm2, %v1055_v32 }
 0x327   : > { %1859 = vmatpush3.xpose.msk.msra.mxu0 %vm724_vm2, %v1224_v35  ;;  %1860 = vmatprep.mubr.msk.f32.mxu0 %vm2231_vm1, %v2230_v0 }
 0x328   : > { %1868 = vmatprep.subr.mxu0 %v2230_v0 }
 0x32a   : > { %1861 = vmatmul.mubr.msk.f32.vlgmr.msra.gmra.mxu0 %vm724_vm2, %v1222_v36 }
 0x32b   : > { %1876 = vmatprep.mubr.msk.f32.mxu0 %vm2231_vm1, %v2230_v0  ;;  %1869 = vmatpush3.msra.mxu0 %v503_v14 }
 0x32c   : > { %v1981_v37 = vpop.eup %1980  ;;  %1870 = vmatprep.subr.mxu0 %v2230_v0 }
 0x32d   : > { %v811_v38 = vmul.f32 %v1981_v37, %v1979_v26  ;;  %1871 = vmatpush3.msra.mxu0 %v502_v15 }
 0x32e   : > { %1872 = vmatprep.subr.mxu0 %v2230_v0 }
 0x32f   : > { %812 = vst.msk [vmem:[%s2570_s27] sm:$0xff] %vm724_vm2, %v811_v38  ;;  %1836 = vmatmul.mubr.msk.f32.vlgmr.msra.gmra.mxu1 %vm724_vm2, %v811_v38  ;;  %1873 = vmatpush3.msra.mxu0 %v501_v16 }
 0x330   : > { %1839 = vmatpush3.xpose.msk.msra.mxu1 %vm724_vm2, %v889_v30  ;;  %1840 = vmatprep.mubr.msk.f32.mxu1 %vm2231_vm1, %v2230_v0 }
 0x331   : > { %1843 = vmatprep.subr.mxu1 %v2230_v0  ;;  %1874 = vmatprep.subr.mxu0 %v2230_v0 }
 0x332   : > { %1875 = vmatpush3.msra.mxu0 %v500_v17 }
 0x333   : > { %1841 = vmatmul.mubr.msk.f32.vlgmr.msra.gmra.mxu1 %vm724_vm2, %v887_v31 }
 0x334   : > { %1845 = vmatprep.mubr.msk.f32.mxu1 %vm2231_vm1, %v2230_v0 }
 0x3e6   : > { %v1128_v39 = vpop.f32.mrf.mxu0 }
 0x3e7   : > { %v1132_v40 = vsel %vm724_vm2, %v1128_v39, -inf }
 0x3e8   : > { %1133 = vmax.xlane.f32.xlu0 %v1132_v40  ;;  %v1852_v41 = vpop.f32.mrf.mxu0 }
 0x3ea   : > { %v1295_v42 = vpop.f32.mrf.mxu0 }
 0x3eb   : > { %v1299_v49 = vsel %vm724_vm2, %v1295_v42, -inf }
 0x3ec   : > { %v1862_v43 = vpop.f32.mrf.mxu0 }
 0x3ef   : > { %v2583_v44 = vpop.f32.mrf.mxu1 }
 0x3f1   : > { %v1837_v45 = vpop.f32.mrf.mxu1 }
 0x3f3   : > { %v960_v46 = vpop.f32.mrf.mxu1 }
 0x3f4   : > { %v964_v47 = vsel %vm724_vm2, %v960_v46, -inf }
 0x3f5   : > { %965 = vmax.xlane.f32.xlu1 %v964_v47  ;;  %v1842_v48 = vpop.f32.mrf.mxu1 }
 0x3f9   : > { %1300 = vmax.xlane.f32.xlu1 %v1299_v49 }
 0x471   : > { %v1134_v50 = vpop.xlane.xlu0 %1133 }
 0x472   : > { %v1135_v51 = vsub.f32 %v1128_v39, %v1134_v50 }
 0x474   : > { %v1136_v52 = vmul.f32 1.442695, %v1135_v51 }
 0x476   : > { %1982 = vpow2.f32 %v1136_v52 }
 0x47e   : > { %v966_v53 = vpop.xlane.xlu1 %965 }
 0x47f   : > { %v967_v61 = vsub.f32 %v960_v46, %v966_v53 }
 0x481   : > { %v968_v62 = vmul.f32 1.442695, %v967_v61 }
 0x482   : > { %v1301_v54 = vpop.xlane.xlu1 %1300 }
 0x483   : > { %v1983_v55 = vpop.eup %1982  ;;  %v1302_v56 = vsub.f32 %v1295_v42, %v1301_v54 }
 0x484   : > { %v1138_v57 = vsel %vm724_vm2, %v1983_v55, 0.0 }
 0x485   : > { %v1303_v58 = vmul.f32 1.442695, %v1302_v56  ;;  %1139 = vadd.xlane.f32.xlu0 %v1138_v57 }
 0x487   : > { %1984 = vpow2.f32 %v1303_v58 }
 0x488   : > { %1986 = vpow2.f32 %v968_v62 }
 0x494   : > { %v1985_v59 = vpop.eup %1984 }
 0x495   : > { %v1305_v60 = vsel %vm724_vm2, %v1985_v59, 0.0  ;;  %v1987_v63 = vpop.eup %1986 }
 0x496   : > { %1306 = vadd.xlane.f32.xlu1 %v1305_v60  ;;  %v970_v1 = vsel %vm724_vm2, %v1987_v63, 0.0 }
 0x49b   : > { %978 = vrot.lane.b32.xlu0 %v2554_v28, %s2232_s25 }
 0x4a7   : > { %1145 = vrot.lane.b32.xlu1 %v2554_v28, %s2233_s26 }
 0x4cb   : > { %971 = vadd.xlane.f32.xlu1 %v970_v1 }
 0x4dc   : > { %1312 = vrot.lane.b32.xlu1 %v2554_v28, %s2234_s28  ;;  %s2623_s28 = scalar_lea.hbm %s2706_s9, %s1758_s29 }
 0x50e   : > { %v1140_v2 = vpop.xlane.xlu0 %1139 }
 0x50f   : > { %1988 = vrcp.f32 %v1140_v2 }
 0x512   : > { %v979_v3 = vpop.permute.xlu0 %978 }
 0x513   : > { %1844 = vmatpush3.msra.mxu1 %v979_v3 }
 0x514   : > { %1853 = vmatprep.subr.mxu1 %v2230_v0 }
 0x51c   : > { %v1989_v4 = vpop.eup %1988 }
 0x51d   : > { %v1142_v5 = vmul.f32 %v1989_v4, %v1983_v55 }
 0x51f   : > { %v1307_v6 = vpop.xlane.xlu1 %1306  ;;  %1743 = vst.msk [vmem:[%s2570_s27 + $0x10] sm:$0xff] %vm724_vm2, %v1142_v5 }
 0x520   : > { %1990 = vrcp.f32 %v1307_v6 }
 0x523   : > { %v1146_v9 = vpop.permute.xlu1 %1145 }
 0x52d   : > { %v1991_v7 = vpop.eup %1990 }
 0x52e   : > { %v1309_v8 = vmul.f32 %v1991_v7, %v1985_v59 }
 0x530   : > { %1747 = vst.msk [vmem:[%s2570_s27 + $0x18] sm:$0xff] %vm724_vm2, %v1309_v8 }
 0x554   : > { %v972_v10 = vpop.xlane.xlu1 %971 }
 0x555   : > { %1992 = vrcp.f32 %v972_v10 }
 0x558   : > { %v1313_v13 = vpop.permute.xlu1 %1312 }
 0x562   : > { %v1993_v11 = vpop.eup %1992 }
 0x563   : > { %v974_v12 = vmul.f32 %v1993_v11, %v1987_v63 }
 0x565   : > { %1739 = vst.msk [vmem:[%s2570_s27 + $0x8] sm:$0xff] %vm724_vm2, %v974_v12  ;;  %1846 = vmatmul.mubr.msk.f32.vlgmr.msra.gmra.mxu1 %vm724_vm2, %v974_v12 }
 0x566   : > { %1854 = vmatpush3.msra.mxu1 %v1146_v9  ;;  %1855 = vmatprep.mubr.msk.f32.mxu1 %vm2231_vm1, %v2230_v0 }
 0x567   : > { %1863 = vmatprep.subr.mxu1 %v2230_v0 }
 0x569   : > { %1856 = vmatmul.mubr.msk.f32.vlgmr.msra.gmra.mxu1 %vm724_vm2, %v1142_v5 }
 0x56a   : > { %1864 = vmatpush3.msra.mxu1 %v1313_v13  ;;  %1865 = vmatprep.mubr.msk.f32.mxu1 %vm2231_vm1, %v2230_v0 }
 0x56d   : > { %1866 = vmatmul.mubr.msk.f32.vlgmr.msra.gmra.mxu1 %vm724_vm2, %v1309_v8 }
 0x625   : > { %v1050_v18 = vpop.f32.mrf.mxu1 }
 0x626   : > { %1389 = vrot.lane.b32.xlu0 %v1050_v18, %s2235_s14 }
 0x627   : > { %v1847_v19 = vpop.f32.mrf.mxu1 }
 0x629   : > { %v1217_v20 = vpop.f32.mrf.mxu1 }
 0x62a   : > { %1393 = vrot.lane.b32.xlu1 %v1217_v20, %s2236_s22 }
 0x62b   : > { %v1857_v21 = vpop.f32.mrf.mxu1 }
 0x62d   : > { %v1384_v22 = vpop.f32.mrf.mxu1 }
 0x62e   : > { %1397 = vrot.lane.b32.xlu0 %v1384_v22, %s2237_s21 }
 0x62f   : > { %v1867_v23 = vpop.f32.mrf.mxu1 }
 0x698   : > { %v1390_v24 = vpop.permute.xlu0 %1389 }
 0x699   : > { %v1400_v25 = vsel %vm724_vm2, %v2583_v44, %v1390_v24 }
 0x69c   : > { %v1394_v0 = vpop.permute.xlu1 %1393 }
 0x69d   : > { %v1402_v26 = vsel %vm1401_vm3, %v1400_v25, %v1394_v0 }
 0x6a0   : > { %v1398_v27 = vpop.permute.xlu0 %1397 }
 0x6a1   : > { %v1404_v28 = vsel %vm1403_vm4, %v1402_v26, %v1398_v27 }
 0x6a2   : > { %1877 = vmatmul.mubr.msk.f32.vlgmr.msra.gmra.mxu0 %vm478_vm0, %v1404_v28 }
 0x6a3   : > { %2117 = shalt.err (!%p2114_p6)
}
 0x6a4   : > { %s2118_s30 = scalar_lea.hbm %s2623_s28, 512  ;;  %s2122_s1 = scalar_lea.hbm %s2706_s9, 1024 }
 0x6a5   : > { %p2119_p9 = scmp.ne.s32.totalorder %s2623_s28, %s2118_s30  ;;  %p2123_p7 = scmp.lt.s32.totalorder %s2623_s28, %s2706_s9 }
 0x6a6   : > { %p2124_p2 = scmp.lt.s32.totalorder %s2122_s1, %s2118_s30 }
 0x6a7   : > { %p2120_p10 = pnand %p2119_p9, %p2384_p12 }
 0x6a8   : > { %p2125_p11 = por %p2124_p2, %p2123_p7 }
 0x6a9   : > { %p2121_p0 = pneg %p2120_p10 }
 0x6ab   : > { %p2126_p3 = pnand %p2125_p11, %p2121_p0 }
 0x6ad   : > { %2129 = shalt.err (!%p2126_p3)
}
 0x6ae   : > { %s2239_s21 = smov 128   ;;  %v1405_v29 = vld [vmem:[#allocation2] sm:$0xff]  ;;  %s2739_s26 = sld [smem:[#allocation26_spill]] }
 0x6af   : > { %1890 = dma.vmem_to_hbm [thread:$0]  (%p2384_p12), %s2625_s18, 512, %s2623_s28, %s1500_s23, %s2239_s21, %s2239_s21, %s2235_s14  }
 0x6b0   : > { %s1753_s17 = sshll.u32 %s2214_s12, 7  ;;  %s465_s13 = scalar_lea.vmem [#allocation11], %s2452_s20 }
 0x6b1   : > { %s1514_s8 = sshll.u32 %s465_s13, 4  ;;  %s2740_s16 = sld [smem:[#allocation27_spill]]  ;;  %s1515_s8 = int_to_ptr.vmem [resolvable:$true] %s1514_s8 }
 0x6b2   : > { %s1495_s18 = scalar_lea.sflag [#allocation5], %s2449_s19  ;;  %s2130_s28 = scalar_lea.vmem %s1515_s8, 128 }
 0x6b3   : > { %p2131_p1 = scmp.ne.s32.totalorder %s1515_s8, %s2130_s28  ;;  %s2240_s23 = smov [#allocation11]  }
 0x6b4   : > { %v1750_v33 = vld [vmem:[%s2739_s26] ss:$0 sm:$0xff]  ;;  %s2134_s15 = sshll.u32 %s2240_s23, 4  ;;  %s2135_s15 = int_to_ptr.vmem [resolvable:$false] %s2134_s15 }
 0x6b5   : > { %p2132_p4 = pnand %p2131_p1, %p2384_p12  ;;  %s2136_s12 = scalar_lea.vmem %s2135_s15, 256 }
 0x6b6   : > { %p2137_p8 = scmp.lt.s32.totalorder %s1515_s8, %s2135_s15  ;;  %p2138_p6 = scmp.lt.s32.totalorder %s2136_s12, %s2130_s28 }
 0x6b7   : > { %s1512_s14 = scalar_lea.hbm %s2740_s16, %s1753_s17  ;;  %p2133_p5 = pneg %p2132_p4 }
 0x6b8   : > { %p2139_p9 = por %p2138_p6, %p2137_p8 }
 0x6ba   : > { %p2140_p10 = pnand %p2139_p9, %p2133_p5 }
 0x762   : > { %v1475_v30 = vpop.f32.mrf.mxu0 }
 0x763   : > { %v1479_v31 = vadd.f32 %v1475_v30, %v1405_v29 }
 0x764   : > { %v1878_v32 = vpop.f32.mrf.mxu0 }
 0x765   : > { %1480 = vst.msk [vmem:[#allocation2] sm:$0xff] %vm478_vm0, %v1479_v31 }
 0x76c   : > { %v1484_v34 = vld [vmem:[#allocation2] sm:$0xff] }
 0x76d   : > { %v1492_v35 = vadd.f32 %v1750_v33, %v1484_v34 }
 0x76f   : > { %1493 = vst.msk [vmem:[%s465_s13] sm:$0xff] %vm478_vm0, %v1492_v35 }
 0x770   : > { %2143 = shalt.err (!%p2140_p10)
}
 0x771   : > { %s2144_s20 = scalar_lea.hbm %s1512_s14, 128  ;;  %s2148_s27 = scalar_lea.hbm %s2740_s16, 256 }
 0x772   : > { %p2145_p0 = scmp.ne.s32.totalorder %s1512_s14, %s2144_s20  ;;  %p2149_p11 = scmp.lt.s32.totalorder %s1512_s14, %s2740_s16 }
 0x773   : > { %p2150_p3 = scmp.lt.s32.totalorder %s2148_s27, %s2144_s20 }
 0x774   : > { %p2146_p7 = pnand %p2145_p0, %p2384_p12 }
 0x775   : > { %p2151_p1 = por %p2150_p3, %p2149_p11 }
 0x776   : > { %p2147_p2 = pneg %p2146_p7 }
 0x778   : > { %p2152_p4 = pnand %p2151_p1, %p2147_p2 }
 0x77a   : > { %2155 = shalt.err (!%p2152_p4)
}
 0x77b   : > { %1889 = dma.vmem_to_hbm [thread:$0]  (%p2384_p12), %s1515_s8, 128, %s1512_s14, %s1495_s18  }
 0x77c PF: > { %s2741_s29 = sld [smem:[#allocation19_spill]] }
 0x77d   : > { %s2743_s26 = sld [smem:[#allocation21_spill]] }
 0x782   : > { %s1545_s17 = sand.u32 1, %s2741_s29  }
 0x783   : > { %p2744_p5 = scmp.ge.s32.totalorder %s2743_s26, 2  ;;  %s1546_s13 = scalar_lea.sflag [#allocation5], %s1545_s17 }
 0x785   : > { %p1908_p8 = pnand %p2744_p5, %p2388_p13 }
 0x787   : > { %p1909_p6 = pneg %p1908_p8 }
 0x789   : > { %2193 = dma.done.wait (%p1909_p6), %s1546_s13, 128  }
 0x78a   : > { %2195 = vsyncadd (%p1909_p6), %s1546_s13, 4294967168  ;;  %s1555_s7 = scalar_lea.sflag [#allocation13], %s1545_s17 }
 0x78b   : > { %2197 = dma.done.wait (%p1909_p6), %s1555_s7, 512  }
 0x78c   : > { %2199 = vsyncadd (%p1909_p6), %s1555_s7, 4294966784  ;;  %s33_s14 = sadd.s32 1, %s2743_s26   ;;  %s2745_s24 = sld [smem:[#allocation23_spill]] }
 0x78d   : > { %p30_p9 = scmp.ge.s32.totalorder %s33_s14, 4   ;;  %s2746_s12 = sld [smem:[#allocation20_spill]] }
 0x78e   : > { %s2747_s13 = sld [smem:[#allocation22_spill]]  ;;  %s2748_s30 = smov %s2206_s10 }
 0x78f   : > { %s2749_s10 = smov %s2210_s11  ;;  %32 = sbr.rel (!%p30_p9) target bundleno = 15 (0xf), region = 157 }
 0x792   : > { %s2750_s11 = smov %s2745_s24 }
 0x794   :  { %1560 = vsyncpa [#allocation4], 1 }
 0x795   :  { %1562 = vsyncpa [#allocation4 + $0x1], 1 }
 0x796   :  { %1563 = vsyncpa [#allocation7], 1 }
 0x797   :  { %1565 = vsyncpa [#allocation7 + $0x1], 1 }
 0x798   :  { %1566 = vsyncpa [#allocation10], 1 }
 0x799   :  { %1567 = vsyncpa [#allocation5], 1 }
 0x79a   :  { %1569 = vsyncpa [#allocation5 + $0x1], 1 }
 0x79b   :  { %1570 = vsyncpa [#allocation13], 1 }
 0x79c   :  { %1572 = vsyncpa [#allocation13 + $0x1], 1 }

</bundles_post_ra>
